<compile_context>
chip_gen: v5e
topology: v5e:2x2
jax: 0.10.0
libtpu: 0.0.40
codegen_flags: <defaults>
</compile_context>

<pallas_src>
import jax
import jax.numpy as jnp
import numpy as np
from jax.experimental import pallas as pl


# ----------------------------- kernels ---------------------------------------
# Both kernels run as a SINGLE grid step with full (1, D) / (D, D) blocks:
# per-grid-step overhead (~0.35 us) would otherwise dominate this tiny matvec,
# and the full-width (1, D) output block gives lane-dense, unmasked stores.

def _identity_kernel(eps_ref, mean_ref, out_ref):
    # covariance == I  =>  L^T == I  =>  sample = mean + eps.
    # Pure VPU add in f32; cast to the consumer dtype on the way out.
    out_ref[...] = (mean_ref[...] + eps_ref[...]).astype(out_ref.dtype)


def _general_kernel(eps_ref, lt_ref, mean_ref, out_ref):
    # General covariance: rsample() affine transform  sample = mean + eps @ L^T.
    # L^T arrives as bf16; feed bf16 operands to the MXU, accumulate in f32,
    # do the elementwise add in f32.
    prod = jnp.dot(eps_ref[...].astype(lt_ref.dtype), lt_ref[...],
                   preferred_element_type=jnp.float32)
    out_ref[...] = (mean_ref[...] + prod).astype(out_ref.dtype)


# ----------------------------- wrappers ---------------------------------------

def sample_identity(mean_row, eps, out_dtype=jnp.float32):
    """sample = mean + eps, eps ~ N(0, I).  mean_row/eps are (1, D)."""
    # TODO(synk): for a bare (1, D) add, letting XLA fuse `mean + eps` into the
    # consumer (or batching >=8 draws into a (B, D) block) beats a standalone
    # pallas_call; kept as a kernel since that is the point of this port.
    D = mean_row.shape[-1]
    return pl.pallas_call(
        _identity_kernel,
        out_shape=jax.ShapeDtypeStruct((1, D), out_dtype),
        grid=(1,),
        in_specs=[pl.BlockSpec((1, D), lambda i: (0, 0)),    # eps
                  pl.BlockSpec((1, D), lambda i: (0, 0))],   # mean
        out_specs=pl.BlockSpec((1, D), lambda i: (0, 0)),
    )(eps, mean_row)


def sample_general(l_t_bf16, mean_row, eps, out_dtype=jnp.float32):
    """sample = mean + eps @ L^T, eps ~ N(0, I).  L^T is (D, D) bf16."""
    D = mean_row.shape[-1]
    # Single grid step, full blocks: bf16 L^T is 0.5 MiB at D=512, far below
    # the default scoped VMEM limit (32 MiB v6e/v7x, 16 MiB v5e) even with the
    # default double buffer.
    # TODO(synk): if D grows into the tens of thousands, tile L^T columns over
    # a "parallel" grid axis (2-way on v7x's two TensorCores) and/or set
    # pipeline_mode=pl.Buffered(1) / raise vmem_limit_bytes; at D<=512 a single
    # full block is optimal.
    return pl.pallas_call(
        _general_kernel,
        out_shape=jax.ShapeDtypeStruct((1, D), out_dtype),
        grid=(1,),
        in_specs=[pl.BlockSpec((1, D), lambda i: (0, 0)),    # eps (f32)
                  pl.BlockSpec((D, D), lambda i: (0, 0)),    # L^T (bf16)
                  pl.BlockSpec((1, D), lambda i: (0, 0))],   # mean (f32)
        out_specs=pl.BlockSpec((1, D), lambda i: (0, 0)),
    )(eps, l_t_bf16, mean_row)


class GaussianResidualGeneratorPallas:
    """JAX/Pallas port of GaussianResidualGenerator."""

    def __init__(self, dim=512, *, key):
        self.dim = dim
        # Deterministic parameter init mirroring torch.randn(dim) / torch.eye(dim).
        self.mean = jax.random.normal(key, (dim,), dtype=jnp.float32)
        self.covariance = jnp.eye(dim, dtype=jnp.float32)
        # MultivariateNormal precomputes scale_tril at construction time
        # (init-time plain JAX, not part of the forward hot path).
        self.scale_tril = jnp.linalg.cholesky(self.covariance)
        # bf16 L^T cached once for the general MXU path (halves the (D,D) HBM
        # read; accumulation stays f32 in-kernel).
        self._scale_tril_t_bf16 = jnp.asarray(self.scale_tril).T.astype(jnp.bfloat16)
        self._mean_row = self.mean.reshape(1, dim)
        # covariance == I makes the (D, D) matvec a mathematical no-op; detect
        # once so the train hot path skips the ~256x larger HBM read + MXU pass.
        self._identity_cov = bool(np.allclose(np.asarray(self.covariance),
                                              np.eye(dim, dtype=np.float32)))

    def __call__(self, x, status, *, rng_key=None):
        if status == "eval":
            # dist.mean is just the mean parameter: return it directly, no
            # kernel launch / eps=0 matvec / (D, D) HBM read.
            return self.mean.astype(x.dtype)
        if status != "train":
            raise ValueError(f"unknown status: {status}")
        assert rng_key is not None, "train path needs an rng_key"
        # Full-entropy eps draw from the complete key (no 31-bit seed collapse,
        # no extra randint dispatch).
        eps = jax.random.normal(rng_key, (1, self.dim), dtype=jnp.float32)
        if self._identity_cov:
            sample = sample_identity(self._mean_row, eps, out_dtype=x.dtype)
        else:
            sample = sample_general(self._scale_tril_t_bf16, self._mean_row, eps,
                                    out_dtype=x.dtype)
        return sample.reshape(self.dim)


if __name__ == "__main__":
    key = jax.random.PRNGKey(0)
    k_param, k_x, k_train, k_gen, k_cov = jax.random.split(key, 5)

    dim = 256  # small, lane-aligned stand-in for the default 512
    gen = GaussianResidualGeneratorPallas(dim=dim, key=k_param)

    # x as in the conv-style caller (NCHW); only its device/dtype matter.
    x = jax.random.normal(k_x, (2, 4, 16, 16), dtype=jnp.float32)

    # --- eval path: dist.mean, returned with no kernel launch. ---
    out_eval = jax.block_until_ready(gen(x, "eval"))
    assert out_eval.shape == (dim,)
    np.testing.assert_allclose(np.asarray(out_eval), np.asarray(gen.mean),
                               rtol=0, atol=0)

    # --- train path (identity-covariance fast path through the Pallas kernel). ---
    out_train = jax.block_until_ready(gen(x, "train", rng_key=k_train))
    assert out_train.shape == (dim,)
    assert bool(jnp.all(jnp.isfinite(out_train)))
    # Deterministic for a fixed key.
    out_train2 = jax.block_until_ready(gen(x, "train", rng_key=k_train))
    np.testing.assert_allclose(np.asarray(out_train), np.asarray(out_train2),
                               rtol=0, atol=0)
    # residual = sample - mean must look like N(0, 1) draws (generous bounds).
    resid = np.asarray(out_train) - np.asarray(gen.mean)
    assert abs(resid.mean()) < 0.5, resid.mean()
    assert 0.6 < resid.std() < 1.4, resid.std()

    # --- exact check of the identity kernel: sample == mean + eps. ---
    eps_id = jax.random.normal(k_train, (1, dim), dtype=jnp.float32)
    s_id = jax.block_until_ready(sample_identity(gen._mean_row, eps_id))
    np.testing.assert_allclose(np.asarray(s_id),
                               np.asarray(gen._mean_row) + np.asarray(eps_id),
                               rtol=1e-6, atol=1e-6)
    np.testing.assert_allclose(np.asarray(s_id).reshape(dim),
                               np.asarray(out_train), rtol=1e-6, atol=1e-6)

    # --- check of the general-covariance kernel (non-identity L^T, MXU path). ---
    a = jax.random.normal(k_cov, (dim, dim), dtype=jnp.float32) / np.sqrt(dim)
    cov = a @ a.T + jnp.eye(dim, dtype=jnp.float32)
    l_t_bf16 = jnp.linalg.cholesky(cov).T.astype(jnp.bfloat16)
    eps_g = jax.random.normal(k_gen, (1, dim), dtype=jnp.float32)
    s_g = jax.block_until_ready(
        sample_general(l_t_bf16, gen._mean_row, eps_g, out_dtype=jnp.float32))
    # Reference uses the same bf16-rounded operands with f32 accumulation;
    # tolerance covers accumulation-order differences on the MXU.
    ref_g = np.asarray(
        gen._mean_row
        + jnp.dot(eps_g.astype(jnp.bfloat16), l_t_bf16,
                  preferred_element_type=jnp.float32))
    np.testing.assert_allclose(np.asarray(s_g), ref_g, rtol=2e-2, atol=2e-2)

    print("KERNEL_OK")
</pallas_src>

<mosaic_0001>
module attributes {stable_mosaic.version = 11 : i64} {
  func.func @_identity_kernel(%arg0: i32, %arg1: memref<1x256xf32, #tpu.memory_space<vmem>>, %arg2: memref<1x256xf32, #tpu.memory_space<vmem>>, %arg3: memref<1x256xf32, #tpu.memory_space<vmem>>) attributes {dimension_semantics = [#tpu.dimension_semantics<arbitrary>], iteration_bounds = array<i64: 1>, scalar_prefetch = 0 : i64, scratch_operands = 0 : i64, tpu.core_type = #tpu.core_type<tc>, window_params = [{pipeline_mode = #tpu.pipeline_mode<synchronous>, transform_indices = @transform_0, window_bounds = array<i64: 1, 256>}, {pipeline_mode = #tpu.pipeline_mode<synchronous>, transform_indices = @transform_1, window_bounds = array<i64: 1, 256>}, {pipeline_mode = #tpu.pipeline_mode<synchronous>, transform_indices = @transform_2, window_bounds = array<i64: 1, 256>}]} {
    %c0 = arith.constant 0 : index
    %c0_0 = arith.constant 0 : index
    %0 = vector.load %arg2[%c0, %c0_0] : memref<1x256xf32, #tpu.memory_space<vmem>>, vector<1x256xf32>
    %c0_1 = arith.constant 0 : index
    %c0_2 = arith.constant 0 : index
    %1 = vector.load %arg1[%c0_1, %c0_2] : memref<1x256xf32, #tpu.memory_space<vmem>>, vector<1x256xf32>
    %2 = arith.addf %0, %1 : vector<1x256xf32>
    %c0_3 = arith.constant 0 : index
    %c0_4 = arith.constant 0 : index
    %3 = vector.load %arg3[%c0_3, %c0_4] : memref<1x256xf32, #tpu.memory_space<vmem>>, vector<1x256xf32>
    tpu.vector_store %arg3[%c0_3, %c0_4], %2 {strides = array<i32>} : memref<1x256xf32, #tpu.memory_space<vmem>>, vector<1x256xf32>,
    return
  }
  func.func @transform_0(%arg0: i32) -> (i32, i32) {
    %c0_i32 = arith.constant 0 : i32
    %c0_i32_0 = arith.constant 0 : i32
    %c0_i32_1 = arith.constant 0 : i32
    return %c0_i32, %c0_i32_0 : i32, i32
  }
  func.func @transform_1(%arg0: i32) -> (i32, i32) {
    %c0_i32 = arith.constant 0 : i32
    %c0_i32_0 = arith.constant 0 : i32
    %c0_i32_1 = arith.constant 0 : i32
    return %c0_i32, %c0_i32_0 : i32, i32
  }
  func.func @transform_2(%arg0: i32) -> (i32, i32) {
    %c0_i32 = arith.constant 0 : i32
    %c0_i32_0 = arith.constant 0 : i32
    %c0_i32_1 = arith.constant 0 : i32
    return %c0_i32, %c0_i32_0 : i32, i32
  }
}

</mosaic_0001>

<bundles_post_ra>
// kernel: tpu_custom_call.1
= control target key start
LH: loop header
LB: loop body
LE: loop exit
PB: predicated region body
PF: predicated region fallthrough
CT: control target
= control target key end

     0   :  { %7 = vsyncpa [#allocation3], 0  ;;  %s174_s0 = inlined_call_operand.hbm [shape: f32[1,256], index: 0, kind: input, shape index: {}]   ;;  %s175_s1 = inlined_call_operand.hbm [shape: f32[1,256], index: 1, kind: input, shape index: {}]   ;;  %s176_s2 = inlined_call_operand.hbm [shape: f32[1,256], index: 2, kind: output, shape index: {}]  }
   0x1   :  { %8 = vsyncpa [#allocation6], 0 }
   0x2   :  { %9 = vsyncpa [#allocation4], 0  ;;  %s15_s11 = sshll.u32 %s174_s0, 4  ;;  %s147_s12 = smov [#allocation2]   ;;  %s16_s11 = int_to_ptr.hbm [resolvable:$true] %s15_s11 }
   0x3   :  { %s17_s13 = sshll.u32 %s147_s12, 4  ;;  %s26_s16 = sshll.u32 %s175_s1, 4  ;;  %s18_s13 = int_to_ptr.vmem [resolvable:$true] %s17_s13  ;;  %s27_s16 = int_to_ptr.hbm [resolvable:$true] %s26_s16 }
   0x4   :  { %20 = dma.hbm_to_vmem [thread:$0]  %s16_s11, 32, %s18_s13, [#allocation3]  }
   0x5   :  { %s148_s17 = smov [#allocation5]  }
   0x6   :  { %s28_s18 = sshll.u32 %s148_s17, 4  ;;  %s29_s18 = int_to_ptr.vmem [resolvable:$true] %s28_s18 }
   0x7   :  { %31 = dma.hbm_to_vmem [thread:$0]  %s27_s16, 32, %s29_s18, [#allocation6]  }
   0x8   :  { %141 = dma.done.wait [#allocation3], 32  }
   0x9   :  { %142 = vsyncadd [#allocation3], 4294967264 }
   0xa   :  { %143 = dma.done.wait [#allocation6], 32  }
   0xb   :  { %144 = vsyncadd [#allocation6], 4294967264  ;;  %v43_v0 = vlaneseq  ;;  %s149_s0 = smov [#allocation7]   ;;  %s55_s22 = sshll.u32 %s176_s2, 4  ;;  %v40_v1 = vld [vmem:[#allocation5] sm:$0x3]  ;;  %s56_s22 = int_to_ptr.hbm [resolvable:$true] %s55_s22 }
   0xc   :  { %s53_s19 = sshll.u32 %s149_s0, 4  ;;  %v41_v2 = vld [vmem:[#allocation2] sm:$0x3]  ;;  %s54_s19 = int_to_ptr.vmem [resolvable:$true] %s53_s19 }
   0xd   :  { %vm45_vm0 = vcmp.lt.s32.totalorder %v43_v0, 256  ;;  %v42_v3 = vadd.f32 %v41_v2, %v40_v1 }
   0xf   :  { %47 = vst.msk [vmem:[#allocation7] sm:$0x3] %vm45_vm0, %v42_v3 }
  0x10   :  { %58 = dma.vmem_to_hbm [thread:$0]  %s54_s19, 32, %s56_s22, [#allocation4]  }
  0x11   :  { %145 = dma.done.wait [#allocation4], 32  }
  0x12   :  { %146 = vsyncadd [#allocation4], 4294967264 }
  0x13   :  { %63 = vsyncpa [#allocation3], 1 }
  0x14   :  { %64 = vsyncpa [#allocation6], 1 }
  0x15   :  { %65 = vsyncpa [#allocation4], 1 }

</bundles_post_ra>
